<compile_context>
chip_gen: v5e
topology: v5e:2x2
jax: 0.10.0
libtpu: 0.0.40
codegen_flags: <defaults>
</compile_context>

<pallas_src>
import jax
import jax.numpy as jnp
from jax.experimental import pallas as pl
from jax.experimental.pallas import tpu as pltpu


def _copy_kernel(x_ref, o_ref):
    # Pure lane-dense memcpy of a (TB, flat_padded) tile.
    o_ref[...] = x_ref[...]


def _round_up(x: int, m: int) -> int:
    return ((x + m - 1) // m) * m


def _choose_tb(n_rows: int, row_bytes: int) -> int:
    """Pick rows-per-block so a block is ~2 MiB, sublane-aligned, VMEM-safe."""
    target_block_bytes = 2 << 20          # ~2 MiB per block (85%+ of HBM roofline)
    vmem_budget_bytes = 12 << 20          # 2 arrays x 2 buffers x block <= ~48 MiB? no:
    # keep 4 * block_bytes under ~12 MiB -> fits v5e's 16 MiB scoped default
    vmem_budget_bytes = 3 << 20           # per-block cap (4x double-buffered = 12 MiB)

    tb = max(1, min(target_block_bytes, vmem_budget_bytes) // max(row_bytes, 1))
    if tb >= n_rows:
        return n_rows                     # full extent: always legal block dim
    # When not full-extent, keep the sublane (second-to-last) dim 8-aligned.
    tb = max(8, (tb // 8) * 8)
    return min(tb, n_rows)


def flatten(x: jax.Array, full: bool = False) -> jax.Array:
    """Pallas equivalent of Flatten(full).forward(x) for NCHW inputs."""
    N = x.shape[0]
    flat = 1
    for d in x.shape[1:]:
        flat *= d

    # Zero-cost metadata reshape: kernel sees an already-flattened 2-D array.
    x2d = x.reshape(N, flat)

    dtype_bytes = jnp.dtype(x.dtype).itemsize

    # Lane-dense padding of the flattened width (unmasked full-width vst).
    flat_p = _round_up(flat, 128)
    if flat_p != flat:
        x2d = jnp.pad(x2d, ((0, 0), (0, flat_p - flat)))

    row_bytes = flat_p * dtype_bytes
    tb = _choose_tb(N, row_bytes)

    # Row padding so the grid divides evenly (partial-block handling avoided).
    n_p = _round_up(N, tb)
    if n_p != N:
        x2d = jnp.pad(x2d, ((0, n_p - N), (0, 0)))

    grid = (n_p // tb,)

    out = pl.pallas_call(
        _copy_kernel,
        out_shape=jax.ShapeDtypeStruct((n_p, flat_p), x.dtype),
        grid_spec=pltpu.PrefetchScalarGridSpec(
            num_scalar_prefetch=0,
            grid=grid,
            in_specs=[pl.BlockSpec((tb, flat_p), lambda i: (i, 0))],
            out_specs=pl.BlockSpec((tb, flat_p), lambda i: (i, 0)),
        ),
        compiler_params=pltpu.CompilerParams(
            dimension_semantics=("parallel",),
        ),
    )(x2d)

    # Strip any padding (static slices; cheap).
    if n_p != N:
        out = out[:N]
    if flat_p != flat:
        out = out[:, :flat]

    if full:
        # x.view(-1): rank-1 flatten; metadata-only reshape.
        out = out.reshape(-1)
    return out


if __name__ == "__main__":
    key = jax.random.PRNGKey(0)
    # Small NCHW activation, consistent with "end of a model" usage.
    x = jax.random.normal(key, (2, 4, 16, 16), dtype=jnp.float32)

    # full=False: (N, C*H*W)
    y = flatten(x, full=False)
    jax.block_until_ready(y)
    assert y.shape == (2, 4 * 16 * 16)
    assert jnp.array_equal(y, x.reshape(2, -1))

    # full=True: (N*C*H*W,)
    y_full = flatten(x, full=True)
    jax.block_until_ready(y_full)
    assert y_full.shape == (2 * 4 * 16 * 16,)
    assert jnp.array_equal(y_full, x.reshape(-1))

    # Non-128-aligned flattened width + non-divisible row count (padding paths).
    x2 = jax.random.normal(key, (3, 3, 5, 7), dtype=jnp.float32)
    y2 = flatten(x2, full=False)
    jax.block_until_ready(y2)
    assert y2.shape == (3, 3 * 5 * 7)
    assert jnp.array_equal(y2, x2.reshape(3, -1))

    print("KERNEL_OK")
</pallas_src>

<mosaic_0001>
module attributes {stable_mosaic.version = 11 : i64} {
  func.func @_copy_kernel(%arg0: i32, %arg1: memref<2x1024xf32, #tpu.memory_space<vmem>>, %arg2: memref<2x1024xf32, #tpu.memory_space<vmem>>) attributes {dimension_semantics = [#tpu.dimension_semantics<parallel>], iteration_bounds = array<i64: 1>, scalar_prefetch = 0 : i64, scratch_operands = 0 : i64, tpu.core_type = #tpu.core_type<tc>, window_params = [{transform_indices = @transform_0, window_bounds = array<i64: 2, 1024>}, {transform_indices = @transform_1, window_bounds = array<i64: 2, 1024>}]} {
    %c0 = arith.constant 0 : index
    %c0_0 = arith.constant 0 : index
    %0 = vector.load %arg1[%c0, %c0_0] : memref<2x1024xf32, #tpu.memory_space<vmem>>, vector<2x1024xf32>
    %c0_1 = arith.constant 0 : index
    %c0_2 = arith.constant 0 : index
    %1 = vector.load %arg2[%c0_1, %c0_2] : memref<2x1024xf32, #tpu.memory_space<vmem>>, vector<2x1024xf32>
    tpu.vector_store %arg2[%c0_1, %c0_2], %0 {strides = array<i32>} : memref<2x1024xf32, #tpu.memory_space<vmem>>, vector<2x1024xf32>,
    return
  }
  func.func @transform_0(%arg0: i32) -> (i32, i32) {
    %c0_i32 = arith.constant 0 : i32
    %c0_i32_0 = arith.constant 0 : i32
    return %arg0, %c0_i32 : i32, i32
  }
  func.func @transform_1(%arg0: i32) -> (i32, i32) {
    %c0_i32 = arith.constant 0 : i32
    %c0_i32_0 = arith.constant 0 : i32
    return %arg0, %c0_i32 : i32, i32
  }
}

</mosaic_0001>

<bundles_post_ra>
// kernel: tpu_custom_call.1
= control target key start
LH: loop header
LB: loop body
LE: loop exit
PB: predicated region body
PF: predicated region fallthrough
CT: control target
= control target key end

     0   :  { %6 = vsyncpa [#allocation3], 0  ;;  %s116_s0 = inlined_call_operand.hbm [shape: f32[2,1024], index: 0, kind: input, shape index: {}]   ;;  %s117_s1 = inlined_call_operand.hbm [shape: f32[2,1024], index: 1, kind: output, shape index: {}]  }
   0x1   :  { %7 = vsyncpa [#allocation4], 0  ;;  %s13_s8 = sshll.u32 %s116_s0, 4  ;;  %s98_s9 = smov [#allocation2]   ;;  %s14_s8 = int_to_ptr.hbm [resolvable:$true] %s13_s8 }
   0x2   :  { %s15_s10 = sshll.u32 %s98_s9, 4  ;;  %s16_s10 = int_to_ptr.vmem [resolvable:$true] %s15_s10 }
   0x3   :  { %18 = dma.hbm_to_vmem [thread:$0]  %s14_s8, 256, %s16_s10, [#allocation3]  }
   0x4   :  { %94 = dma.done.wait [#allocation3], 256  }
   0x5   :  { %95 = vsyncadd [#allocation3], 4294967040  ;;  %s99_s11 = smov [#allocation5]   ;;  %s34_s15 = sshll.u32 %s117_s1, 4  ;;  %v23_v0 = vld [vmem:[#allocation2] sm:$0xff]  ;;  %v24_v1 = vld [vmem:[#allocation2 + $0x8] sm:$0xff]  ;;  %s35_s15 = int_to_ptr.hbm [resolvable:$true] %s34_s15 }
   0x6   :  { %s32_s12 = sshll.u32 %s99_s11, 4  ;;  %25 = vst [vmem:[#allocation5] sm:$0xff] %v23_v0  ;;  %s33_s12 = int_to_ptr.vmem [resolvable:$true] %s32_s12 }
   0x7   :  { %26 = vst [vmem:[#allocation5 + $0x8] sm:$0xff] %v24_v1 }
   0x8   :  { %37 = dma.vmem_to_hbm [thread:$0]  %s33_s12, 256, %s35_s15, [#allocation4]  }
   0x9   :  { %96 = dma.done.wait [#allocation4], 256  }
   0xa   :  { %97 = vsyncadd [#allocation4], 4294967040 }
   0xb   :  { %42 = vsyncpa [#allocation3], 1 }
   0xc   :  { %43 = vsyncpa [#allocation4], 1 }

</bundles_post_ra>
